<compile_context>
chip_gen: v5e
topology: v5e:2x2
jax: 0.10.0
libtpu: 0.0.40
codegen_flags: <defaults>
</compile_context>

<pallas_src>
import jax
import jax.numpy as jnp
from jax import lax
from jax.experimental import pallas as pl
from jax.experimental.pallas import tpu as pltpu


def _ffn_kernel(x_ref, w1_ref, b1_ref, w2_ref, b2_ref, o_ref):
    # x: [TM, D]; w1/w2: [D, D] in PyTorch [out, in] layout; b1/b2: [1, D] f32.
    cdt = w1_ref.dtype                       # compute dtype for the MXU (bf16 or f32)
    x = x_ref[...].astype(cdt)

    # h = relu(x @ w1.T + b1): MXU matmul with f32 accumulation,
    # bias + relu epilogue stays in f32 on the VPU (free filler under the MXU).
    h = lax.dot_general(
        x, w1_ref[...],
        dimension_numbers=(((1,), (1,)), ((), ())),   # contract last dims: x[M,K] . w[N,K]
        preferred_element_type=jnp.float32,
    )
    h = jnp.maximum(h + b1_ref[...], 0.0)

    # TODO(synk): dropout after fc1 / fc2 is identity (inference mode).

    y = lax.dot_general(
        h.astype(cdt), w2_ref[...],
        dimension_numbers=(((1,), (1,)), ((), ())),
        preferred_element_type=jnp.float32,
    )
    o_ref[...] = (y + b2_ref[...]).astype(o_ref.dtype)


def _round_up(a, b):
    return (a + b - 1) // b * b


def _vmem_bytes(tm, d, x_bytes, w_bytes, out_bytes, weight_bufs):
    weights = weight_bufs * 2 * d * d * w_bytes                 # w1 + w2
    biases = weight_bufs * 2 * 8 * _round_up(d, 128) * 4        # (1, D) f32 tiles, padded
    acts = 2 * tm * d * (x_bytes + out_bytes)                   # double-buffered x / out
    interm = 3 * tm * d * 4                                     # f32 h, y + cast headroom
    return weights + biases + acts + interm


def feedforward_pallas(x, w1, b1, w2, b2, *,
                       compute_dtype=jnp.bfloat16, block_m=512):
    """x: [B, S, D]; w1, w2: [D, D] PyTorch nn.Linear weights ([out, in]);
    b1, b2: [D]. Returns [B, S, D] in x.dtype. Dropout = identity (eval mode)."""
    B, S, D = x.shape
    M = B * S
    out_dtype = x.dtype

    x2d = x.reshape(M, D)
    w1c = w1.astype(compute_dtype)            # bf16 weights: halves VMEM residency + HBM bytes
    w2c = w2.astype(compute_dtype)
    b1_2d = b1.reshape(1, D).astype(jnp.float32)
    b2_2d = b2.reshape(1, D).astype(jnp.float32)

    x_bytes = jnp.dtype(x.dtype).itemsize
    w_bytes = jnp.dtype(compute_dtype).itemsize
    o_bytes = jnp.dtype(out_dtype).itemsize

    # --- choose the M-tile: largest MXU-aligned tile under a v7x-safe VMEM budget ---
    vmem_target = 48 * 1024 * 1024            # headroom below v7x's 64 MiB physical VMEM
    m_aligned = _round_up(M, 16)              # sublane alignment (16 for bf16 packing)
    if m_aligned <= block_m:
        tm = m_aligned                        # whole problem fits in one (small) tile
    else:
        tm = 128
        for cand in (block_m, 256, 128):      # multiples of 256/128 for the MXU
            if cand <= m_aligned and _vmem_bytes(
                    cand, D, x_bytes, w_bytes, o_bytes, 2) <= vmem_target:
                tm = cand
                break

    m_pad = _round_up(M, tm)
    if m_pad != M:
        x2d = jnp.pad(x2d, ((0, m_pad - M), (0, 0)))
    grid = (m_pad // tm,)

    vmem_limit = max(
        16 * 1024 * 1024,
        min(_vmem_bytes(tm, D, x_bytes, w_bytes, o_bytes, 2) + (4 << 20),
            64 * 1024 * 1024),
    )

    def build_and_run(weight_pipeline_mode):
        if weight_pipeline_mode is None:
            def res_spec(shape):
                return pl.BlockSpec(shape, lambda i: (0, 0))
        else:
            def res_spec(shape):
                return pl.BlockSpec(shape, lambda i: (0, 0),
                                    pipeline_mode=weight_pipeline_mode)
        return pl.pallas_call(
            _ffn_kernel,
            out_shape=jax.ShapeDtypeStruct((m_pad, D), out_dtype),
            grid_spec=pltpu.PrefetchScalarGridSpec(
                num_scalar_prefetch=0,
                grid=grid,
                in_specs=[
                    pl.BlockSpec((tm, D), lambda i: (i, 0)),   # x row-tile (streamed)
                    res_spec((D, D)),                          # w1 (VMEM-resident)
                    res_spec((1, D)),                          # b1 (VMEM-resident)
                    res_spec((D, D)),                          # w2 (VMEM-resident)
                    res_spec((1, D)),                          # b2 (VMEM-resident)
                ],
                out_specs=pl.BlockSpec((tm, D), lambda i: (i, 0)),
            ),
            compiler_params=pltpu.CompilerParams(
                dimension_semantics=("parallel",),   # rows independent -> v7x megacore
                vmem_limit_bytes=int(vmem_limit),
            ),
        )(x2d, w1c, b1_2d, w2c, b2_2d)

    try:
        # Weights/biases never change block index: single-buffer them to reclaim VMEM.
        out2d = build_and_run(pl.Buffered(1))
    except Exception:
        # Fallback for JAX versions where pipeline_mode=pl.Buffered(1) is unsupported.
        out2d = build_and_run(None)

    if m_pad != M:
        out2d = out2d[:M]
    return out2d.reshape(B, S, D)


def feedforward_ref(x, w1, b1, w2, b2):
    h = jnp.einsum("bsd,ed->bse", x, w1) + b1
    h = jnp.maximum(h, 0.0)
    y = jnp.einsum("bsd,ed->bse", h, w2) + b2
    return y


if __name__ == "__main__":
    B, S, D = 2, 8, 32
    key = jax.random.PRNGKey(0)
    kx, kw1, kb1, kw2, kb2 = jax.random.split(key, 5)

    x = jax.random.normal(kx, (B, S, D), dtype=jnp.float32)
    # nn.Linear(d_model, d_model): weight [D, D], bias [D]; deterministic init.
    bound = float(D) ** -0.5
    w1 = jax.random.uniform(kw1, (D, D), minval=-bound, maxval=bound, dtype=jnp.float32)
    b1 = jax.random.uniform(kb1, (D,), minval=-bound, maxval=bound, dtype=jnp.float32)
    w2 = jax.random.uniform(kw2, (D, D), minval=-bound, maxval=bound, dtype=jnp.float32)
    b2 = jax.random.uniform(kb2, (D,), minval=-bound, maxval=bound, dtype=jnp.float32)

    ref = feedforward_ref(x, w1, b1, w2, b2)

    # f32 MXU path: tight parity with the reference.
    out_f32 = feedforward_pallas(x, w1, b1, w2, b2, compute_dtype=jnp.float32)
    jax.block_until_ready(out_f32)
    assert out_f32.shape == (B, S, D)
    assert jnp.allclose(out_f32, ref, atol=1e-4, rtol=1e-4)

    # bf16 MXU path (default, perf): f32 accumulation, loose tolerance.
    out_bf16 = feedforward_pallas(x, w1, b1, w2, b2)
    jax.block_until_ready(out_bf16)
    assert out_bf16.shape == (B, S, D)
    assert jnp.allclose(out_bf16, ref, atol=5e-2, rtol=5e-2)

    print("KERNEL_OK")
</pallas_src>

<mosaic_0001>
module attributes {stable_mosaic.version = 11 : i64} {
  func.func @_ffn_kernel(%arg0: i32, %arg1: memref<16x32xf32, #tpu.memory_space<vmem>>, %arg2: memref<32x32xf32, #tpu.memory_space<vmem>>, %arg3: memref<1x32xf32, #tpu.memory_space<vmem>>, %arg4: memref<32x32xf32, #tpu.memory_space<vmem>>, %arg5: memref<1x32xf32, #tpu.memory_space<vmem>>, %arg6: memref<16x32xf32, #tpu.memory_space<vmem>>) attributes {dimension_semantics = [#tpu.dimension_semantics<parallel>], iteration_bounds = array<i64: 1>, scalar_prefetch = 0 : i64, scratch_operands = 0 : i64, tpu.core_type = #tpu.core_type<tc>, window_params = [{transform_indices = @transform_0, window_bounds = array<i64: 16, 32>}, {pipeline_mode = #tpu.pipeline_mode<synchronous>, transform_indices = @transform_1, window_bounds = array<i64: 32, 32>}, {pipeline_mode = #tpu.pipeline_mode<synchronous>, transform_indices = @transform_2, window_bounds = array<i64: 1, 32>}, {pipeline_mode = #tpu.pipeline_mode<synchronous>, transform_indices = @transform_3, window_bounds = array<i64: 32, 32>}, {pipeline_mode = #tpu.pipeline_mode<synchronous>, transform_indices = @transform_4, window_bounds = array<i64: 1, 32>}, {transform_indices = @transform_5, window_bounds = array<i64: 16, 32>}]} {
    %c0 = arith.constant 0 : index
    %c0_0 = arith.constant 0 : index
    %0 = vector.load %arg1[%c0, %c0_0] : memref<16x32xf32, #tpu.memory_space<vmem>>, vector<16x32xf32>
    %c0_1 = arith.constant 0 : index
    %c0_2 = arith.constant 0 : index
    %1 = vector.load %arg2[%c0_1, %c0_2] : memref<32x32xf32, #tpu.memory_space<vmem>>, vector<32x32xf32>
    %cst = arith.constant dense<0.000000e+00> : vector<16x32xf32>
    %2 = tpu.matmul %0, %1, %cst {dimension_numbers = #tpu.dot_dimension_numbers<[1], [1], [0], [0], [0, 0, 1, 0], [], []>} : vector<16x32xf32>, vector<32x32xf32>, vector<16x32xf32> -> vector<16x32xf32>
    %c0_3 = arith.constant 0 : index
    %c0_4 = arith.constant 0 : index
    %3 = vector.load %arg3[%c0_3, %c0_4] : memref<1x32xf32, #tpu.memory_space<vmem>>, vector<1x32xf32>
    %4 = vector.broadcast %3 : vector<1x32xf32> to vector<16x32xf32>
    %5 = arith.addf %2, %4 : vector<16x32xf32>
    %cst_5 = arith.constant 0.000000e+00 : f32
    %6 = vector.broadcast %cst_5 : f32 to vector<16x32xf32>
    %7 = arith.maximumf %5, %6 : vector<16x32xf32>
    %c0_6 = arith.constant 0 : index
    %c0_7 = arith.constant 0 : index
    %8 = vector.load %arg4[%c0_6, %c0_7] : memref<32x32xf32, #tpu.memory_space<vmem>>, vector<32x32xf32>
    %cst_8 = arith.constant dense<0.000000e+00> : vector<16x32xf32>
    %9 = tpu.matmul %7, %8, %cst_8 {dimension_numbers = #tpu.dot_dimension_numbers<[1], [1], [0], [0], [0, 0, 1, 0], [], []>} : vector<16x32xf32>, vector<32x32xf32>, vector<16x32xf32> -> vector<16x32xf32>
    %c0_9 = arith.constant 0 : index
    %c0_10 = arith.constant 0 : index
    %10 = vector.load %arg5[%c0_9, %c0_10] : memref<1x32xf32, #tpu.memory_space<vmem>>, vector<1x32xf32>
    %11 = vector.broadcast %10 : vector<1x32xf32> to vector<16x32xf32>
    %12 = arith.addf %9, %11 : vector<16x32xf32>
    %c0_11 = arith.constant 0 : index
    %c0_12 = arith.constant 0 : index
    %13 = vector.load %arg6[%c0_11, %c0_12] : memref<16x32xf32, #tpu.memory_space<vmem>>, vector<16x32xf32>
    tpu.vector_store %arg6[%c0_11, %c0_12], %12 {strides = array<i32>} : memref<16x32xf32, #tpu.memory_space<vmem>>, vector<16x32xf32>,
    return
  }
  func.func @transform_0(%arg0: i32) -> (i32, i32) {
    %c0_i32 = arith.constant 0 : i32
    %c0_i32_0 = arith.constant 0 : i32
    return %arg0, %c0_i32 : i32, i32
  }
  func.func @transform_1(%arg0: i32) -> (i32, i32) {
    %c0_i32 = arith.constant 0 : i32
    %c0_i32_0 = arith.constant 0 : i32
    %c0_i32_1 = arith.constant 0 : i32
    return %c0_i32, %c0_i32_0 : i32, i32
  }
  func.func @transform_2(%arg0: i32) -> (i32, i32) {
    %c0_i32 = arith.constant 0 : i32
    %c0_i32_0 = arith.constant 0 : i32
    %c0_i32_1 = arith.constant 0 : i32
    return %c0_i32, %c0_i32_0 : i32, i32
  }
  func.func @transform_3(%arg0: i32) -> (i32, i32) {
    %c0_i32 = arith.constant 0 : i32
    %c0_i32_0 = arith.constant 0 : i32
    %c0_i32_1 = arith.constant 0 : i32
    return %c0_i32, %c0_i32_0 : i32, i32
  }
  func.func @transform_4(%arg0: i32) -> (i32, i32) {
    %c0_i32 = arith.constant 0 : i32
    %c0_i32_0 = arith.constant 0 : i32
    %c0_i32_1 = arith.constant 0 : i32
    return %c0_i32, %c0_i32_0 : i32, i32
  }
  func.func @transform_5(%arg0: i32) -> (i32, i32) {
    %c0_i32 = arith.constant 0 : i32
    %c0_i32_0 = arith.constant 0 : i32
    return %arg0, %c0_i32 : i32, i32
  }
}

module attributes {stable_mosaic.version = 11 : i64} {
  func.func @_ffn_kernel(%arg0: i32, %arg1: memref<16x32xf32, #tpu.memory_space<vmem>>, %arg2: memref<32x32xf32, #tpu.memory_space<vmem>>, %arg3: memref<1x32xf32, #tpu.memory_space<vmem>>, %arg4: memref<32x32xf32, #tpu.memory_space<vmem>>, %arg5: memref<1x32xf32, #tpu.memory_space<vmem>>, %arg6: memref<16x32xf32, #tpu.memory_space<vmem>>) attributes {dimension_semantics = [#tpu.dimension_semantics<parallel>], iteration_bounds = array<i64: 1>, scalar_prefetch = 0 : i64, scratch_operands = 0 : i64, tpu.core_type = #tpu.core_type<tc>, window_params = [{transform_indices = @transform_0, window_bounds = array<i64: 16, 32>}, {pipeline_mode = #tpu.pipeline_mode<synchronous>, transform_indices = @transform_1, window_bounds = array<i64: 32, 32>}, {pipeline_mode = #tpu.pipeline_mode<synchronous>, transform_indices = @transform_2, window_bounds = array<i64: 1, 32>}, {pipeline_mode = #tpu.pipeline_mode<synchronous>, transform_indices = @transform_3, window_bounds = array<i64: 32, 32>}, {pipeline_mode = #tpu.pipeline_mode<synchronous>, transform_indices = @transform_4, window_bounds = array<i64: 1, 32>}, {transform_indices = @transform_5, window_bounds = array<i64: 16, 32>}]} {
    %c0 = arith.constant 0 : index
    %c0_0 = arith.constant 0 : index
    %0 = vector.load %arg1[%c0, %c0_0] : memref<16x32xf32, #tpu.memory_space<vmem>>, vector<16x32xf32>
    %c0_1 = arith.constant 0 : index
    %c0_2 = arith.constant 0 : index
    %1 = vector.load %arg2[%c0_1, %c0_2] : memref<32x32xf32, #tpu.memory_space<vmem>>, vector<32x32xf32>
    %cst = arith.constant dense<0.000000e+00> : vector<16x32xf32>
    %2 = tpu.matmul %0, %1, %cst {dimension_numbers = #tpu.dot_dimension_numbers<[1], [1], [0], [0], [0, 0, 1, 0], [], []>} : vector<16x32xf32>, vector<32x32xf32>, vector<16x32xf32> -> vector<16x32xf32>
    %c0_3 = arith.constant 0 : index
    %c0_4 = arith.constant 0 : index
    %3 = vector.load %arg3[%c0_3, %c0_4] : memref<1x32xf32, #tpu.memory_space<vmem>>, vector<1x32xf32>
    %4 = vector.broadcast %3 : vector<1x32xf32> to vector<16x32xf32>
    %5 = arith.addf %2, %4 : vector<16x32xf32>
    %cst_5 = arith.constant 0.000000e+00 : f32
    %6 = vector.broadcast %cst_5 : f32 to vector<16x32xf32>
    %7 = arith.maximumf %5, %6 : vector<16x32xf32>
    %c0_6 = arith.constant 0 : index
    %c0_7 = arith.constant 0 : index
    %8 = vector.load %arg4[%c0_6, %c0_7] : memref<32x32xf32, #tpu.memory_space<vmem>>, vector<32x32xf32>
    %cst_8 = arith.constant dense<0.000000e+00> : vector<16x32xf32>
    %9 = tpu.matmul %7, %8, %cst_8 {dimension_numbers = #tpu.dot_dimension_numbers<[1], [1], [0], [0], [0, 0, 1, 0], [], []>} : vector<16x32xf32>, vector<32x32xf32>, vector<16x32xf32> -> vector<16x32xf32>
    %c0_9 = arith.constant 0 : index
    %c0_10 = arith.constant 0 : index
    %10 = vector.load %arg5[%c0_9, %c0_10] : memref<1x32xf32, #tpu.memory_space<vmem>>, vector<1x32xf32>
    %11 = vector.broadcast %10 : vector<1x32xf32> to vector<16x32xf32>
    %12 = arith.addf %9, %11 : vector<16x32xf32>
    %c0_11 = arith.constant 0 : index
    %c0_12 = arith.constant 0 : index
    %13 = vector.load %arg6[%c0_11, %c0_12] : memref<16x32xf32, #tpu.memory_space<vmem>>, vector<16x32xf32>
    tpu.vector_store %arg6[%c0_11, %c0_12], %12 {strides = array<i32>} : memref<16x32xf32, #tpu.memory_space<vmem>>, vector<16x32xf32>,
    return
  }
  func.func @transform_0(%arg0: i32) -> (i32, i32) {
    %c0_i32 = arith.constant 0 : i32
    %c0_i32_0 = arith.constant 0 : i32
    return %arg0, %c0_i32 : i32, i32
  }
  func.func @transform_1(%arg0: i32) -> (i32, i32) {
    %c0_i32 = arith.constant 0 : i32
    %c0_i32_0 = arith.constant 0 : i32
    %c0_i32_1 = arith.constant 0 : i32
    return %c0_i32, %c0_i32_0 : i32, i32
  }
  func.func @transform_2(%arg0: i32) -> (i32, i32) {
    %c0_i32 = arith.constant 0 : i32
    %c0_i32_0 = arith.constant 0 : i32
    %c0_i32_1 = arith.constant 0 : i32
    return %c0_i32, %c0_i32_0 : i32, i32
  }
  func.func @transform_3(%arg0: i32) -> (i32, i32) {
    %c0_i32 = arith.constant 0 : i32
    %c0_i32_0 = arith.constant 0 : i32
    %c0_i32_1 = arith.constant 0 : i32
    return %c0_i32, %c0_i32_0 : i32, i32
  }
  func.func @transform_4(%arg0: i32) -> (i32, i32) {
    %c0_i32 = arith.constant 0 : i32
    %c0_i32_0 = arith.constant 0 : i32
    %c0_i32_1 = arith.constant 0 : i32
    return %c0_i32, %c0_i32_0 : i32, i32
  }
  func.func @transform_5(%arg0: i32) -> (i32, i32) {
    %c0_i32 = arith.constant 0 : i32
    %c0_i32_0 = arith.constant 0 : i32
    return %arg0, %c0_i32 : i32, i32
  }
}

</mosaic_0001>

<bundles_post_ra>
// kernel: tpu_custom_call.1
= control target key start
LH: loop header
LB: loop body
LE: loop exit
PB: predicated region body
PF: predicated region fallthrough
CT: control target
= control target key end

     0   :  { %10 = vsyncpa [#allocation3], 0  ;;  %s411_s0 = inlined_call_operand.hbm [shape: f32[16,32], index: 0, kind: input, shape index: {}]   ;;  %s412_s1 = inlined_call_operand.hbm [shape: f32[32,32], index: 1, kind: input, shape index: {}]   ;;  %s413_s2 = inlined_call_operand.vmem [shape: f32[1,32], index: 2, kind: input, shape index: {}]   ;;  %s414_s3 = inlined_call_operand.hbm [shape: f32[32,32], index: 3, kind: input, shape index: {}]   ;;  %s415_s4 = inlined_call_operand.vmem [shape: f32[1,32], index: 4, kind: input, shape index: {}]   ;;  %s416_s5 = inlined_call_operand.hbm [shape: f32[16,32], index: 5, kind: output, shape index: {}]  }
   0x1   :  { %11 = vsyncpa [#allocation6], 0 }
   0x2   :  { %12 = vsyncpa [#allocation4], 0  ;;  %s30_s20 = sshll.u32 %s412_s1, 4  ;;  %s323_s21 = smov [#allocation5]   ;;  %s31_s20 = int_to_ptr.hbm [resolvable:$true] %s30_s20 }
   0x3   :  { %s32_s22 = sshll.u32 %s323_s21, 4  ;;  %s17_s25 = sshll.u32 %s411_s0, 4  ;;  %s33_s22 = int_to_ptr.vmem [resolvable:$true] %s32_s22  ;;  %s18_s25 = int_to_ptr.hbm [resolvable:$true] %s17_s25 }
   0x4   :  { %s324_s26 = smov 128   ;;  %s325_s27 = smov 8  }
   0x5   :  { %38 = dma.hbm_to_vmem [thread:$0]  %s31_s20, 512, %s33_s22, [#allocation6], %s324_s26, %s324_s26, %s325_s27  }
   0x6   :  { %s326_s28 = smov [#allocation2]   ;;  %s45_s1 = sshll.u32 %s414_s3, 4  ;;  %s46_s1 = int_to_ptr.hbm [resolvable:$true] %s45_s1 }
   0x7   :  { %s19_s29 = sshll.u32 %s326_s28, 4  ;;  %s327_s0 = smov [#allocation7]   ;;  %s20_s29 = int_to_ptr.vmem [resolvable:$true] %s19_s29 }
   0x8   :  { %25 = dma.hbm_to_vmem [thread:$0]  %s18_s25, 256, %s20_s29, [#allocation3], %s324_s26, %s324_s26, %s325_s27  }
   0x9   :  { %s47_s7 = sshll.u32 %s327_s0, 4  ;;  %s48_s7 = int_to_ptr.vmem [resolvable:$true] %s47_s7 }
   0xa   :  { %53 = dma.hbm_to_vmem [thread:$0]  %s46_s1, 512, %s48_s7, [#allocation6], %s324_s26, %s324_s26, %s325_s27  }
   0xb   :  { %317 = dma.done.wait [#allocation3], 256  }
   0xc   :  { %318 = vsyncadd [#allocation3], 4294967040 }
   0xd   :  { %319 = dma.done.wait [#allocation6], 1024  }
   0xe   :  { %320 = vsyncadd [#allocation6], 4294966272  ;;  %vm78_vm0 = vcmask 261120   ;;  %v73_v0 = vld [vmem:[#allocation5 + $0x18] sm:$0xff]  ;;  %v72_v1 = vld [vmem:[#allocation5 + $0x10] sm:$0xff]  ;;  %s328_s11 = smov [#allocation8]  }
   0xf   :  { %205 = vmatpush.xpose.msk.msra.mxu2 %vm78_vm0, %v73_v0  ;;  %193 = vmatpush.xpose.msk.msra.mxu0 %vm78_vm0, %v73_v0  ;;  %v125_v2 = vld [vmem:[#allocation7 + $0x18] sm:$0xff]  ;;  %v124_v3 = vld [vmem:[#allocation7 + $0x10] sm:$0xff]  ;;  %v71_v4 = vld [vmem:[#allocation5 + $0x8] sm:$0xff]  ;;  %s179_s14 = sshll.u32 %s416_s5, 4  ;;  %s180_s14 = int_to_ptr.hbm [resolvable:$true] %s179_s14 }
  0x10   :  { %209 = vmatpush.xpose.msk.msra.mxu3 %vm78_vm0, %v125_v2  ;;  %199 = vmatpush.xpose.msk.msra.mxu1 %vm78_vm0, %v125_v2  ;;  %v123_v5 = vld [vmem:[#allocation7 + $0x8] sm:$0xff]  ;;  %v70_v6 = vld [vmem:[#allocation5] sm:$0xff]  ;;  %v69_v7 = vld [vmem:[#allocation2 + $0x8] sm:$0xff] }
  0x11   :  { %v68_v8 = vld [vmem:[#allocation2] sm:$0xff]  ;;  %v122_v9 = vld [vmem:[#allocation7] sm:$0xff] }
  0x12   :  { %v219_v10 = vld [vmem:[%s413_s2] ss:$0 sm:$0xff]  ;;  %s177_s2 = sshll.u32 %s328_s11, 4  ;;  %s178_s2 = int_to_ptr.vmem [resolvable:$true] %s177_s2 }
  0x13   :  { %206 = vmatpush.xpose.msk.msra.mxu2 %vm78_vm0, %v72_v1  ;;  %194 = vmatpush.xpose.msk.msra.mxu0 %vm78_vm0, %v72_v1  ;;  %v220_v17 = vld [vmem:[%s415_s4] ss:$0 sm:$0xff] }
  0x14   :  { %210 = vmatpush.xpose.msk.msra.mxu3 %vm78_vm0, %v124_v3  ;;  %200 = vmatpush.xpose.msk.msra.mxu1 %vm78_vm0, %v124_v3 }
  0x17   :  { %207 = vmatpush.xpose.msk.msra.mxu2 %vm78_vm0, %v71_v4  ;;  %195 = vmatpush.xpose.msk.msra.mxu0 %vm78_vm0, %v71_v4 }
  0x18   :  { %211 = vmatpush.xpose.msk.msra.mxu3 %vm78_vm0, %v123_v5  ;;  %201 = vmatpush.xpose.msk.msra.mxu1 %vm78_vm0, %v123_v5 }
  0x1b   :  { %208 = vmatpush.xpose.msk.msra.mxu2 %vm78_vm0, %v70_v6  ;;  %196 = vmatpush.xpose.msk.msra.mxu0 %vm78_vm0, %v70_v6 }
  0x1c   :  { %212 = vmatpush.xpose.msk.msra.mxu3 %vm78_vm0, %v122_v9  ;;  %202 = vmatpush.xpose.msk.msra.mxu1 %vm78_vm0, %v122_v9 }
  0x1e   :  { %198 = vmatmul.msk.f32.vlgmr.msra.gmra.mxu2 %vm78_vm0, %v69_v7  ;;  %197 = vmatmul.msk.f32.vlgmr.msra.gmra.mxu0 %vm78_vm0, %v68_v8 }
  0x9b   :  { %v114_v11 = vpop.f32.mrf.mxu0 }
  0x9c   :  { %v115_v12 = vadd.f32 %v219_v10, %v114_v11 }
  0x9e   :  { %v120_v13 = vmax.f32 %v115_v12, 0.0 }
  0xa0   :  { %203 = vmatmul.msk.f32.vlgmr.msra.gmra.mxu1 %vm78_vm0, %v120_v13 }
  0xa1   :  { %v117_v14 = vpop.f32.mrf.mxu2 }
  0xa2   :  { %v118_v15 = vadd.f32 %v219_v10, %v117_v14 }
  0xa4   :  { %v121_v16 = vmax.f32 %v118_v15, 0.0 }
  0xa6   :  { %204 = vmatmul.msk.f32.vlgmr.msra.gmra.mxu3 %vm78_vm0, %v121_v16 }
 0x11d   :  { %v165_v18 = vpop.f32.mrf.mxu1 }
 0x11e   :  { %v166_v19 = vadd.f32 %v220_v17, %v165_v18 }
 0x120   :  { %171 = vst.msk [vmem:[#allocation8] sm:$0xff] %vm78_vm0, %v166_v19 }
 0x129   :  { %v168_v20 = vpop.f32.mrf.mxu3 }
 0x12a   :  { %v169_v21 = vadd.f32 %v220_v17, %v168_v20 }
 0x12c   :  { %172 = vst.msk [vmem:[#allocation8 + $0x8] sm:$0xff] %vm78_vm0, %v169_v21 }
 0x12d   :  { %185 = dma.vmem_to_hbm [thread:$0]  %s178_s2, 256, %s180_s14, [#allocation4], %s324_s26, %s324_s26, %s325_s27  }
 0x12e   :  { %321 = dma.done.wait [#allocation4], 256  }
 0x12f   :  { %322 = vsyncadd [#allocation4], 4294967040 }
 0x130   :  { %190 = vsyncpa [#allocation3], 1 }
 0x131   :  { %191 = vsyncpa [#allocation6], 1 }
 0x132   :  { %192 = vsyncpa [#allocation4], 1 }

// kernel: tpu_custom_call.1
= control target key start
LH: loop header
LB: loop body
LE: loop exit
PB: predicated region body
PF: predicated region fallthrough
CT: control target
= control target key end

     0   :  { %10 = vsyncpa [#allocation3], 0  ;;  %s411_s0 = inlined_call_operand.hbm [shape: f32[16,32], index: 0, kind: input, shape index: {}]   ;;  %s412_s1 = inlined_call_operand.hbm [shape: f32[32,32], index: 1, kind: input, shape index: {}]   ;;  %s413_s2 = inlined_call_operand.vmem [shape: f32[1,32], index: 2, kind: input, shape index: {}]   ;;  %s414_s3 = inlined_call_operand.hbm [shape: f32[32,32], index: 3, kind: input, shape index: {}]   ;;  %s415_s4 = inlined_call_operand.vmem [shape: f32[1,32], index: 4, kind: input, shape index: {}]   ;;  %s416_s5 = inlined_call_operand.hbm [shape: f32[16,32], index: 5, kind: output, shape index: {}]  }
   0x1   :  { %11 = vsyncpa [#allocation6], 0 }
   0x2   :  { %12 = vsyncpa [#allocation4], 0  ;;  %s30_s20 = sshll.u32 %s412_s1, 4  ;;  %s323_s21 = smov [#allocation5]   ;;  %s31_s20 = int_to_ptr.hbm [resolvable:$true] %s30_s20 }
   0x3   :  { %s32_s22 = sshll.u32 %s323_s21, 4  ;;  %s17_s25 = sshll.u32 %s411_s0, 4  ;;  %s33_s22 = int_to_ptr.vmem [resolvable:$true] %s32_s22  ;;  %s18_s25 = int_to_ptr.hbm [resolvable:$true] %s17_s25 }
   0x4   :  { %s324_s26 = smov 128   ;;  %s325_s27 = smov 8  }
   0x5   :  { %38 = dma.hbm_to_vmem [thread:$0]  %s31_s20, 512, %s33_s22, [#allocation6], %s324_s26, %s324_s26, %s325_s27  }
   0x6   :  { %s326_s28 = smov [#allocation2]   ;;  %s45_s1 = sshll.u32 %s414_s3, 4  ;;  %s46_s1 = int_to_ptr.hbm [resolvable:$true] %s45_s1 }
   0x7   :  { %s19_s29 = sshll.u32 %s326_s28, 4  ;;  %s327_s0 = smov [#allocation7]   ;;  %s20_s29 = int_to_ptr.vmem [resolvable:$true] %s19_s29 }
   0x8   :  { %25 = dma.hbm_to_vmem [thread:$0]  %s18_s25, 256, %s20_s29, [#allocation3], %s324_s26, %s324_s26, %s325_s27  }
   0x9   :  { %s47_s7 = sshll.u32 %s327_s0, 4  ;;  %s48_s7 = int_to_ptr.vmem [resolvable:$true] %s47_s7 }
   0xa   :  { %53 = dma.hbm_to_vmem [thread:$0]  %s46_s1, 512, %s48_s7, [#allocation6], %s324_s26, %s324_s26, %s325_s27  }
   0xb   :  { %317 = dma.done.wait [#allocation3], 256  }
   0xc   :  { %318 = vsyncadd [#allocation3], 4294967040 }
   0xd   :  { %319 = dma.done.wait [#allocation6], 1024  }
   0xe   :  { %320 = vsyncadd [#allocation6], 4294966272  ;;  %vm78_vm0 = vcmask 261120   ;;  %v73_v0 = vld [vmem:[#allocation5 + $0x18] sm:$0xff]  ;;  %v72_v1 = vld [vmem:[#allocation5 + $0x10] sm:$0xff]  ;;  %s328_s11 = smov [#allocation8]  }
   0xf   :  { %205 = vmatpush.xpose.msk.msra.mxu2 %vm78_vm0, %v73_v0  ;;  %193 = vmatpush.xpose.msk.msra.mxu0 %vm78_vm0, %v73_v0  ;;  %v125_v2 = vld [vmem:[#allocation7 + $0x18] sm:$0xff]  ;;  %v124_v3 = vld [vmem:[#allocation7 + $0x10] sm:$0xff]  ;;  %v71_v4 = vld [vmem:[#allocation5 + $0x8] sm:$0xff]  ;;  %s179_s14 = sshll.u32 %s416_s5, 4  ;;  %s180_s14 = int_to_ptr.hbm [resolvable:$true] %s179_s14 }
  0x10   :  { %209 = vmatpush.xpose.msk.msra.mxu3 %vm78_vm0, %v125_v2  ;;  %199 = vmatpush.xpose.msk.msra.mxu1 %vm78_vm0, %v125_v2  ;;  %v123_v5 = vld [vmem:[#allocation7 + $0x8] sm:$0xff]  ;;  %v70_v6 = vld [vmem:[#allocation5] sm:$0xff]  ;;  %v69_v7 = vld [vmem:[#allocation2 + $0x8] sm:$0xff] }
  0x11   :  { %v68_v8 = vld [vmem:[#allocation2] sm:$0xff]  ;;  %v122_v9 = vld [vmem:[#allocation7] sm:$0xff] }
  0x12   :  { %v219_v10 = vld [vmem:[%s413_s2] ss:$0 sm:$0xff]  ;;  %s177_s2 = sshll.u32 %s328_s11, 4  ;;  %s178_s2 = int_to_ptr.vmem [resolvable:$true] %s177_s2 }
  0x13   :  { %206 = vmatpush.xpose.msk.msra.mxu2 %vm78_vm0, %v72_v1  ;;  %194 = vmatpush.xpose.msk.msra.mxu0 %vm78_vm0, %v72_v1  ;;  %v220_v17 = vld [vmem:[%s415_s4] ss:$0 sm:$0xff] }
  0x14   :  { %210 = vmatpush.xpose.msk.msra.mxu3 %vm78_vm0, %v124_v3  ;;  %200 = vmatpush.xpose.msk.msra.mxu1 %vm78_vm0, %v124_v3 }
  0x17   :  { %207 = vmatpush.xpose.msk.msra.mxu2 %vm78_vm0, %v71_v4  ;;  %195 = vmatpush.xpose.msk.msra.mxu0 %vm78_vm0, %v71_v4 }
  0x18   :  { %211 = vmatpush.xpose.msk.msra.mxu3 %vm78_vm0, %v123_v5  ;;  %201 = vmatpush.xpose.msk.msra.mxu1 %vm78_vm0, %v123_v5 }
  0x1b   :  { %208 = vmatpush.xpose.msk.msra.mxu2 %vm78_vm0, %v70_v6  ;;  %196 = vmatpush.xpose.msk.msra.mxu0 %vm78_vm0, %v70_v6 }
  0x1c   :  { %212 = vmatpush.xpose.msk.msra.mxu3 %vm78_vm0, %v122_v9  ;;  %202 = vmatpush.xpose.msk.msra.mxu1 %vm78_vm0, %v122_v9 }
  0x1e   :  { %198 = vmatmul.msk.f32.vlgmr.msra.gmra.mxu2 %vm78_vm0, %v69_v7  ;;  %197 = vmatmul.msk.f32.vlgmr.msra.gmra.mxu0 %vm78_vm0, %v68_v8 }
  0x9b   :  { %v114_v11 = vpop.f32.mrf.mxu0 }
  0x9c   :  { %v115_v12 = vadd.f32 %v219_v10, %v114_v11 }
  0x9e   :  { %v120_v13 = vmax.f32 %v115_v12, 0.0 }
  0xa0   :  { %203 = vmatmul.msk.f32.vlgmr.msra.gmra.mxu1 %vm78_vm0, %v120_v13 }
  0xa1   :  { %v117_v14 = vpop.f32.mrf.mxu2 }
  0xa2   :  { %v118_v15 = vadd.f32 %v219_v10, %v117_v14 }
  0xa4   :  { %v121_v16 = vmax.f32 %v118_v15, 0.0 }
  0xa6   :  { %204 = vmatmul.msk.f32.vlgmr.msra.gmra.mxu3 %vm78_vm0, %v121_v16 }
 0x11d   :  { %v165_v18 = vpop.f32.mrf.mxu1 }
 0x11e   :  { %v166_v19 = vadd.f32 %v220_v17, %v165_v18 }
 0x120   :  { %171 = vst.msk [vmem:[#allocation8] sm:$0xff] %vm78_vm0, %v166_v19 }
 0x129   :  { %v168_v20 = vpop.f32.mrf.mxu3 }
 0x12a   :  { %v169_v21 = vadd.f32 %v220_v17, %v168_v20 }
 0x12c   :  { %172 = vst.msk [vmem:[#allocation8 + $0x8] sm:$0xff] %vm78_vm0, %v169_v21 }
 0x12d   :  { %185 = dma.vmem_to_hbm [thread:$0]  %s178_s2, 256, %s180_s14, [#allocation4], %s324_s26, %s324_s26, %s325_s27  }
 0x12e   :  { %321 = dma.done.wait [#allocation4], 256  }
 0x12f   :  { %322 = vsyncadd [#allocation4], 4294967040 }
 0x130   :  { %190 = vsyncpa [#allocation3], 1 }
 0x131   :  { %191 = vsyncpa [#allocation6], 1 }
 0x132   :  { %192 = vsyncpa [#allocation4], 1 }

</bundles_post_ra>
